<compile_context>
chip_gen: v5e
topology: v5e:2x2
jax: 0.10.0
libtpu: 0.0.40
codegen_flags: <defaults>
</compile_context>

<pallas_src>
import math

import jax
import jax.numpy as jnp
from jax.experimental import pallas as pl
from jax.experimental.pallas import tpu as pltpu


def _make_embed_kernel(seq_len, tm, d_model, unroll):
    scale = math.sqrt(d_model)

    def kernel(ids_ref, emb_hbm, pe_ref, out_ref, gbuf, sems):
        """ids_ref : SMEM (B*S,) int32   — scalar-prefetched token ids
           emb_hbm : HBM  (V, D)         — embedding table, never copied wholesale
           pe_ref  : VMEM (tm, D)        — PE row tile (batch-invariant -> reused)
           out_ref : VMEM (1, tm, D)
           gbuf    : VMEM (tm, D)        — gather destination scratch
           sems    : DMA semaphores, one per gathered row"""
        s_t = pl.program_id(0)
        b = pl.program_id(1)
        base = b * seq_len + s_t * tm

        # Issue all row-gather DMAs first (many outstanding copies) ...
        @pl.loop(0, tm, unroll=unroll)
        def _issue(r):
            tok = ids_ref[base + r]
            pltpu.make_async_copy(emb_hbm.at[tok], gbuf.at[r], sems.at[r]).start()

        # ... then wait for all of them.
        @pl.loop(0, tm, unroll=unroll)
        def _wait(r):
            pltpu.make_async_copy(emb_hbm.at[0], gbuf.at[r], sems.at[r]).wait()

        # One fused scale + PE add + full-tile store.
        out_ref[0] = gbuf[...] * jnp.asarray(scale, gbuf.dtype) + pe_ref[...]
        # TODO(synk): training-mode dropout would go here via pltpu.prng_seed /
        # pltpu.prng_random_bits; eval mode => identity.

    return kernel


def _pick_seq_tile(seq_len, block_rows):
    """Largest tile that (a) divides S and (b) satisfies the (8,128) block rule."""
    if seq_len <= block_rows:
        return seq_len                      # full dim -> always a legal block
    for t in range(block_rows, 7, -1):
        if seq_len % t == 0 and t % 8 == 0:
            return t
    return seq_len                          # fallback: single tile over full S


def sinusoidal_pe(seq_len, d_model, dtype=jnp.float32):
    pos = jnp.arange(seq_len, dtype=jnp.float32)[:, None]          # (S, 1)
    idx = jnp.arange(0, d_model, 2, dtype=jnp.float32)             # (ceil(D/2),)
    div = jnp.exp(-math.log(10000.0) * idx / d_model)
    ang = pos * div                                                 # (S, ceil(D/2))
    pe = jnp.zeros((seq_len, d_model), dtype=jnp.float32)
    pe = pe.at[:, 0::2].set(jnp.sin(ang))
    pe = pe.at[:, 1::2].set(jnp.cos(ang[:, : d_model // 2]))        # odd-D safe
    return pe.astype(dtype)


def transformer_embedding(ids, emb_table, pe, *, block_rows=512):
    """ids: (B, S) int32, emb_table: (V, D), pe: (>=S, D) -> (B, S, D)."""
    B, S = ids.shape
    V, D = emb_table.shape
    pe = pe[:S]

    tm = _pick_seq_tile(S, block_rows)
    n_s = S // tm
    unroll = tm <= 64
    kernel = _make_embed_kernel(S, tm, D, unroll)

    out = pl.pallas_call(
        kernel,
        out_shape=jax.ShapeDtypeStruct((B, S, D), emb_table.dtype),
        grid_spec=pltpu.PrefetchScalarGridSpec(
            num_scalar_prefetch=1,                 # ids -> SMEM, visible to index_maps
            grid=(n_s, B),                         # batch innermost: PE tile reused across B
            in_specs=[
                pl.BlockSpec(memory_space=pl.ANY),                    # table stays in HBM
                pl.BlockSpec((tm, D), lambda s, b, ids: (s, 0)),      # PE: batch-invariant
            ],
            out_specs=pl.BlockSpec((1, tm, D), lambda s, b, ids: (b, s, 0)),
            scratch_shapes=[
                pltpu.VMEM((tm, D), emb_table.dtype),                 # gather buffer
                pltpu.SemaphoreType.DMA((tm,)),                       # one sem per row
            ],
        ),
        compiler_params=pltpu.CompilerParams(
            dimension_semantics=("parallel", "parallel"),             # v7x: both TCs usable
        ),
    )(ids.reshape(B * S).astype(jnp.int32), emb_table, pe)
    return out


if __name__ == "__main__":
    # Small, deterministic setup consistent with the module's forward pass.
    B, S = 2, 8
    vocab_size, d_model = 64, 32

    key = jax.random.PRNGKey(0)
    k_ids, k_emb = jax.random.split(key)

    ids = jax.random.randint(k_ids, (B, S), 0, vocab_size, dtype=jnp.int32)
    # nn.Embedding default init ~ N(0, 1); deterministic here.
    emb_table = jax.random.normal(k_emb, (vocab_size, d_model), dtype=jnp.float32)
    pe = sinusoidal_pe(S, d_model)

    out = jax.block_until_ready(transformer_embedding(ids, emb_table, pe))

    # Pure-JAX reference (eval mode: dropout = identity).
    ref = emb_table[ids] * jnp.float32(math.sqrt(d_model)) + pe[None, :, :]
    assert out.shape == (B, S, d_model)
    # Exact row gather now (no MXU decomposition) -> tight tolerance.
    assert jnp.allclose(out, ref, atol=1e-5, rtol=1e-5), "mismatch vs reference"

    print("KERNEL_OK")
</pallas_src>

<mosaic_0001>
module attributes {stable_mosaic.version = 11 : i64} {
  func.func @kernel(%arg0: i32, %arg1: i32, %arg2: memref<16xi32, #tpu.memory_space<smem>>, %arg3: memref<64x32xf32, #tpu.memory_space<any>>, %arg4: memref<8x32xf32, #tpu.memory_space<vmem>>, %arg5: memref<1x8x32xf32, #tpu.memory_space<vmem>>, %arg6: memref<8x32xf32, #tpu.memory_space<vmem>>, %arg7: memref<8x!tpu.dma_semaphore, #tpu.memory_space<semaphore_mem>>) attributes {dimension_semantics = [#tpu.dimension_semantics<parallel>, #tpu.dimension_semantics<parallel>], iteration_bounds = array<i64: 1, 2>, scalar_prefetch = 1 : i64, scratch_operands = 2 : i64, tpu.core_type = #tpu.core_type<tc>, window_params = [{}, {transform_indices = @transform_1, window_bounds = array<i64: 8, 32>}, {transform_indices = @transform_2, window_bounds = array<i64: 1, 8, 32>}]} {
    %c8_i32 = arith.constant 8 : i32
    %0 = arith.muli %arg1, %c8_i32 : i32
    %c8_i32_0 = arith.constant 8 : i32
    %1 = arith.muli %arg0, %c8_i32_0 : i32
    %2 = arith.addi %0, %1 : i32
    %c0_i32 = arith.constant 0 : i32
    %c1_i32 = arith.constant 1 : i32
    %3 = arith.muli %c0_i32, %c1_i32 : i32
    %c0_i32_1 = arith.constant 0 : i32
    %4 = arith.addi %c0_i32_1, %3 : i32
    %5 = arith.addi %2, %4 : i32
    %6 = arith.index_cast %5 : i32 to index
    %7 = memref.load %arg2[%6] : memref<16xi32, #tpu.memory_space<smem>>
    %c0_i32_2 = arith.constant 0 : i32
    %8 = tpu.memref_slice %arg3[%7, %c0_i32_2] : memref<64x32xf32, #tpu.memory_space<any>> -> memref<1x32xf32, #tpu.memory_space<any>>
    %9 = tpu.memref_squeeze %8 : memref<1x32xf32, #tpu.memory_space<any>> -> memref<32xf32, #tpu.memory_space<any>>
    %c0_i32_3 = arith.constant 0 : i32
    %10 = tpu.memref_slice %arg6[%4, %c0_i32_3] : memref<8x32xf32, #tpu.memory_space<vmem>> -> memref<1x32xf32, #tpu.memory_space<vmem>>
    %11 = tpu.memref_squeeze %10 : memref<1x32xf32, #tpu.memory_space<vmem>> -> memref<32xf32, #tpu.memory_space<vmem>>
    %12 = tpu.memref_slice %arg7[%4] : memref<8x!tpu.dma_semaphore, #tpu.memory_space<semaphore_mem>> -> memref<1x!tpu.dma_semaphore, #tpu.memory_space<semaphore_mem>>
    %13 = tpu.memref_squeeze %12 : memref<1x!tpu.dma_semaphore, #tpu.memory_space<semaphore_mem>> -> memref<!tpu.dma_semaphore, #tpu.memory_space<semaphore_mem>>
    tpu.enqueue_dma source(%9 : memref<32xf32, #tpu.memory_space<any>>) target(%11 : memref<32xf32, #tpu.memory_space<vmem>>) target_semaphore(%13 : memref<!tpu.dma_semaphore, #tpu.memory_space<semaphore_mem>>)
    %c1_i32_4 = arith.constant 1 : i32
    %c1_i32_5 = arith.constant 1 : i32
    %14 = arith.muli %c1_i32_4, %c1_i32_5 : i32
    %c0_i32_6 = arith.constant 0 : i32
    %15 = arith.addi %c0_i32_6, %14 : i32
    %16 = arith.addi %2, %15 : i32
    %17 = arith.index_cast %16 : i32 to index
    %18 = memref.load %arg2[%17] : memref<16xi32, #tpu.memory_space<smem>>
    %c0_i32_7 = arith.constant 0 : i32
    %19 = tpu.memref_slice %arg3[%18, %c0_i32_7] : memref<64x32xf32, #tpu.memory_space<any>> -> memref<1x32xf32, #tpu.memory_space<any>>
    %20 = tpu.memref_squeeze %19 : memref<1x32xf32, #tpu.memory_space<any>> -> memref<32xf32, #tpu.memory_space<any>>
    %c0_i32_8 = arith.constant 0 : i32
    %21 = tpu.memref_slice %arg6[%15, %c0_i32_8] : memref<8x32xf32, #tpu.memory_space<vmem>> -> memref<1x32xf32, #tpu.memory_space<vmem>>
    %22 = tpu.memref_squeeze %21 : memref<1x32xf32, #tpu.memory_space<vmem>> -> memref<32xf32, #tpu.memory_space<vmem>>
    %23 = tpu.memref_slice %arg7[%15] : memref<8x!tpu.dma_semaphore, #tpu.memory_space<semaphore_mem>> -> memref<1x!tpu.dma_semaphore, #tpu.memory_space<semaphore_mem>>
    %24 = tpu.memref_squeeze %23 : memref<1x!tpu.dma_semaphore, #tpu.memory_space<semaphore_mem>> -> memref<!tpu.dma_semaphore, #tpu.memory_space<semaphore_mem>>
    tpu.enqueue_dma source(%20 : memref<32xf32, #tpu.memory_space<any>>) target(%22 : memref<32xf32, #tpu.memory_space<vmem>>) target_semaphore(%24 : memref<!tpu.dma_semaphore, #tpu.memory_space<semaphore_mem>>)
    %c2_i32 = arith.constant 2 : i32
    %c1_i32_9 = arith.constant 1 : i32
    %25 = arith.muli %c2_i32, %c1_i32_9 : i32
    %c0_i32_10 = arith.constant 0 : i32
    %26 = arith.addi %c0_i32_10, %25 : i32
    %27 = arith.addi %2, %26 : i32
    %28 = arith.index_cast %27 : i32 to index
    %29 = memref.load %arg2[%28] : memref<16xi32, #tpu.memory_space<smem>>
    %c0_i32_11 = arith.constant 0 : i32
    %30 = tpu.memref_slice %arg3[%29, %c0_i32_11] : memref<64x32xf32, #tpu.memory_space<any>> -> memref<1x32xf32, #tpu.memory_space<any>>
    %31 = tpu.memref_squeeze %30 : memref<1x32xf32, #tpu.memory_space<any>> -> memref<32xf32, #tpu.memory_space<any>>
    %c0_i32_12 = arith.constant 0 : i32
    %32 = tpu.memref_slice %arg6[%26, %c0_i32_12] : memref<8x32xf32, #tpu.memory_space<vmem>> -> memref<1x32xf32, #tpu.memory_space<vmem>>
    %33 = tpu.memref_squeeze %32 : memref<1x32xf32, #tpu.memory_space<vmem>> -> memref<32xf32, #tpu.memory_space<vmem>>
    %34 = tpu.memref_slice %arg7[%26] : memref<8x!tpu.dma_semaphore, #tpu.memory_space<semaphore_mem>> -> memref<1x!tpu.dma_semaphore, #tpu.memory_space<semaphore_mem>>
    %35 = tpu.memref_squeeze %34 : memref<1x!tpu.dma_semaphore, #tpu.memory_space<semaphore_mem>> -> memref<!tpu.dma_semaphore, #tpu.memory_space<semaphore_mem>>
    tpu.enqueue_dma source(%31 : memref<32xf32, #tpu.memory_space<any>>) target(%33 : memref<32xf32, #tpu.memory_space<vmem>>) target_semaphore(%35 : memref<!tpu.dma_semaphore, #tpu.memory_space<semaphore_mem>>)
    %c3_i32 = arith.constant 3 : i32
    %c1_i32_13 = arith.constant 1 : i32
    %36 = arith.muli %c3_i32, %c1_i32_13 : i32
    %c0_i32_14 = arith.constant 0 : i32
    %37 = arith.addi %c0_i32_14, %36 : i32
    %38 = arith.addi %2, %37 : i32
    %39 = arith.index_cast %38 : i32 to index
    %40 = memref.load %arg2[%39] : memref<16xi32, #tpu.memory_space<smem>>
    %c0_i32_15 = arith.constant 0 : i32
    %41 = tpu.memref_slice %arg3[%40, %c0_i32_15] : memref<64x32xf32, #tpu.memory_space<any>> -> memref<1x32xf32, #tpu.memory_space<any>>
    %42 = tpu.memref_squeeze %41 : memref<1x32xf32, #tpu.memory_space<any>> -> memref<32xf32, #tpu.memory_space<any>>
    %c0_i32_16 = arith.constant 0 : i32
    %43 = tpu.memref_slice %arg6[%37, %c0_i32_16] : memref<8x32xf32, #tpu.memory_space<vmem>> -> memref<1x32xf32, #tpu.memory_space<vmem>>
    %44 = tpu.memref_squeeze %43 : memref<1x32xf32, #tpu.memory_space<vmem>> -> memref<32xf32, #tpu.memory_space<vmem>>
    %45 = tpu.memref_slice %arg7[%37] : memref<8x!tpu.dma_semaphore, #tpu.memory_space<semaphore_mem>> -> memref<1x!tpu.dma_semaphore, #tpu.memory_space<semaphore_mem>>
    %46 = tpu.memref_squeeze %45 : memref<1x!tpu.dma_semaphore, #tpu.memory_space<semaphore_mem>> -> memref<!tpu.dma_semaphore, #tpu.memory_space<semaphore_mem>>
    tpu.enqueue_dma source(%42 : memref<32xf32, #tpu.memory_space<any>>) target(%44 : memref<32xf32, #tpu.memory_space<vmem>>) target_semaphore(%46 : memref<!tpu.dma_semaphore, #tpu.memory_space<semaphore_mem>>)
    %c4_i32 = arith.constant 4 : i32
    %c1_i32_17 = arith.constant 1 : i32
    %47 = arith.muli %c4_i32, %c1_i32_17 : i32
    %c0_i32_18 = arith.constant 0 : i32
    %48 = arith.addi %c0_i32_18, %47 : i32
    %49 = arith.addi %2, %48 : i32
    %50 = arith.index_cast %49 : i32 to index
    %51 = memref.load %arg2[%50] : memref<16xi32, #tpu.memory_space<smem>>
    %c0_i32_19 = arith.constant 0 : i32
    %52 = tpu.memref_slice %arg3[%51, %c0_i32_19] : memref<64x32xf32, #tpu.memory_space<any>> -> memref<1x32xf32, #tpu.memory_space<any>>
    %53 = tpu.memref_squeeze %52 : memref<1x32xf32, #tpu.memory_space<any>> -> memref<32xf32, #tpu.memory_space<any>>
    %c0_i32_20 = arith.constant 0 : i32
    %54 = tpu.memref_slice %arg6[%48, %c0_i32_20] : memref<8x32xf32, #tpu.memory_space<vmem>> -> memref<1x32xf32, #tpu.memory_space<vmem>>
    %55 = tpu.memref_squeeze %54 : memref<1x32xf32, #tpu.memory_space<vmem>> -> memref<32xf32, #tpu.memory_space<vmem>>
    %56 = tpu.memref_slice %arg7[%48] : memref<8x!tpu.dma_semaphore, #tpu.memory_space<semaphore_mem>> -> memref<1x!tpu.dma_semaphore, #tpu.memory_space<semaphore_mem>>
    %57 = tpu.memref_squeeze %56 : memref<1x!tpu.dma_semaphore, #tpu.memory_space<semaphore_mem>> -> memref<!tpu.dma_semaphore, #tpu.memory_space<semaphore_mem>>
    tpu.enqueue_dma source(%53 : memref<32xf32, #tpu.memory_space<any>>) target(%55 : memref<32xf32, #tpu.memory_space<vmem>>) target_semaphore(%57 : memref<!tpu.dma_semaphore, #tpu.memory_space<semaphore_mem>>)
    %c5_i32 = arith.constant 5 : i32
    %c1_i32_21 = arith.constant 1 : i32
    %58 = arith.muli %c5_i32, %c1_i32_21 : i32
    %c0_i32_22 = arith.constant 0 : i32
    %59 = arith.addi %c0_i32_22, %58 : i32
    %60 = arith.addi %2, %59 : i32
    %61 = arith.index_cast %60 : i32 to index
    %62 = memref.load %arg2[%61] : memref<16xi32, #tpu.memory_space<smem>>
    %c0_i32_23 = arith.constant 0 : i32
    %63 = tpu.memref_slice %arg3[%62, %c0_i32_23] : memref<64x32xf32, #tpu.memory_space<any>> -> memref<1x32xf32, #tpu.memory_space<any>>
    %64 = tpu.memref_squeeze %63 : memref<1x32xf32, #tpu.memory_space<any>> -> memref<32xf32, #tpu.memory_space<any>>
    %c0_i32_24 = arith.constant 0 : i32
    %65 = tpu.memref_slice %arg6[%59, %c0_i32_24] : memref<8x32xf32, #tpu.memory_space<vmem>> -> memref<1x32xf32, #tpu.memory_space<vmem>>
    %66 = tpu.memref_squeeze %65 : memref<1x32xf32, #tpu.memory_space<vmem>> -> memref<32xf32, #tpu.memory_space<vmem>>
    %67 = tpu.memref_slice %arg7[%59] : memref<8x!tpu.dma_semaphore, #tpu.memory_space<semaphore_mem>> -> memref<1x!tpu.dma_semaphore, #tpu.memory_space<semaphore_mem>>
    %68 = tpu.memref_squeeze %67 : memref<1x!tpu.dma_semaphore, #tpu.memory_space<semaphore_mem>> -> memref<!tpu.dma_semaphore, #tpu.memory_space<semaphore_mem>>
    tpu.enqueue_dma source(%64 : memref<32xf32, #tpu.memory_space<any>>) target(%66 : memref<32xf32, #tpu.memory_space<vmem>>) target_semaphore(%68 : memref<!tpu.dma_semaphore, #tpu.memory_space<semaphore_mem>>)
    %c6_i32 = arith.constant 6 : i32
    %c1_i32_25 = arith.constant 1 : i32
    %69 = arith.muli %c6_i32, %c1_i32_25 : i32
    %c0_i32_26 = arith.constant 0 : i32
    %70 = arith.addi %c0_i32_26, %69 : i32
    %71 = arith.addi %2, %70 : i32
    %72 = arith.index_cast %71 : i32 to index
    %73 = memref.load %arg2[%72] : memref<16xi32, #tpu.memory_space<smem>>
    %c0_i32_27 = arith.constant 0 : i32
    %74 = tpu.memref_slice %arg3[%73, %c0_i32_27] : memref<64x32xf32, #tpu.memory_space<any>> -> memref<1x32xf32, #tpu.memory_space<any>>
    %75 = tpu.memref_squeeze %74 : memref<1x32xf32, #tpu.memory_space<any>> -> memref<32xf32, #tpu.memory_space<any>>
    %c0_i32_28 = arith.constant 0 : i32
    %76 = tpu.memref_slice %arg6[%70, %c0_i32_28] : memref<8x32xf32, #tpu.memory_space<vmem>> -> memref<1x32xf32, #tpu.memory_space<vmem>>
    %77 = tpu.memref_squeeze %76 : memref<1x32xf32, #tpu.memory_space<vmem>> -> memref<32xf32, #tpu.memory_space<vmem>>
    %78 = tpu.memref_slice %arg7[%70] : memref<8x!tpu.dma_semaphore, #tpu.memory_space<semaphore_mem>> -> memref<1x!tpu.dma_semaphore, #tpu.memory_space<semaphore_mem>>
    %79 = tpu.memref_squeeze %78 : memref<1x!tpu.dma_semaphore, #tpu.memory_space<semaphore_mem>> -> memref<!tpu.dma_semaphore, #tpu.memory_space<semaphore_mem>>
    tpu.enqueue_dma source(%75 : memref<32xf32, #tpu.memory_space<any>>) target(%77 : memref<32xf32, #tpu.memory_space<vmem>>) target_semaphore(%79 : memref<!tpu.dma_semaphore, #tpu.memory_space<semaphore_mem>>)
    %c7_i32 = arith.constant 7 : i32
    %c1_i32_29 = arith.constant 1 : i32
    %80 = arith.muli %c7_i32, %c1_i32_29 : i32
    %c0_i32_30 = arith.constant 0 : i32
    %81 = arith.addi %c0_i32_30, %80 : i32
    %82 = arith.addi %2, %81 : i32
    %83 = arith.index_cast %82 : i32 to index
    %84 = memref.load %arg2[%83] : memref<16xi32, #tpu.memory_space<smem>>
    %c0_i32_31 = arith.constant 0 : i32
    %85 = tpu.memref_slice %arg3[%84, %c0_i32_31] : memref<64x32xf32, #tpu.memory_space<any>> -> memref<1x32xf32, #tpu.memory_space<any>>
    %86 = tpu.memref_squeeze %85 : memref<1x32xf32, #tpu.memory_space<any>> -> memref<32xf32, #tpu.memory_space<any>>
    %c0_i32_32 = arith.constant 0 : i32
    %87 = tpu.memref_slice %arg6[%81, %c0_i32_32] : memref<8x32xf32, #tpu.memory_space<vmem>> -> memref<1x32xf32, #tpu.memory_space<vmem>>
    %88 = tpu.memref_squeeze %87 : memref<1x32xf32, #tpu.memory_space<vmem>> -> memref<32xf32, #tpu.memory_space<vmem>>
    %89 = tpu.memref_slice %arg7[%81] : memref<8x!tpu.dma_semaphore, #tpu.memory_space<semaphore_mem>> -> memref<1x!tpu.dma_semaphore, #tpu.memory_space<semaphore_mem>>
    %90 = tpu.memref_squeeze %89 : memref<1x!tpu.dma_semaphore, #tpu.memory_space<semaphore_mem>> -> memref<!tpu.dma_semaphore, #tpu.memory_space<semaphore_mem>>
    tpu.enqueue_dma source(%86 : memref<32xf32, #tpu.memory_space<any>>) target(%88 : memref<32xf32, #tpu.memory_space<vmem>>) target_semaphore(%90 : memref<!tpu.dma_semaphore, #tpu.memory_space<semaphore_mem>>)
    %c8_i32_33 = arith.constant 8 : i32
    %c0_i32_34 = arith.constant 0 : i32
    %c1_i32_35 = arith.constant 1 : i32
    %91 = arith.muli %c0_i32_34, %c1_i32_35 : i32
    %c0_i32_36 = arith.constant 0 : i32
    %92 = arith.addi %c0_i32_36, %91 : i32
    %c0_i32_37 = arith.constant 0 : i32
    %c0_i32_38 = arith.constant 0 : i32
    %93 = tpu.memref_slice %arg3[%c0_i32_37, %c0_i32_38] : memref<64x32xf32, #tpu.memory_space<any>> -> memref<1x32xf32, #tpu.memory_space<any>>
    %94 = tpu.memref_squeeze %93 : memref<1x32xf32, #tpu.memory_space<any>> -> memref<32xf32, #tpu.memory_space<any>>
    %c0_i32_39 = arith.constant 0 : i32
    %95 = tpu.memref_slice %arg6[%92, %c0_i32_39] : memref<8x32xf32, #tpu.memory_space<vmem>> -> memref<1x32xf32, #tpu.memory_space<vmem>>
    %96 = tpu.memref_squeeze %95 : memref<1x32xf32, #tpu.memory_space<vmem>> -> memref<32xf32, #tpu.memory_space<vmem>>
    %97 = tpu.memref_slice %arg7[%92] : memref<8x!tpu.dma_semaphore, #tpu.memory_space<semaphore_mem>> -> memref<1x!tpu.dma_semaphore, #tpu.memory_space<semaphore_mem>>
    %98 = tpu.memref_squeeze %97 : memref<1x!tpu.dma_semaphore, #tpu.memory_space<semaphore_mem>> -> memref<!tpu.dma_semaphore, #tpu.memory_space<semaphore_mem>>
    tpu.wait_dma2 semaphore(%98 : memref<!tpu.dma_semaphore, #tpu.memory_space<semaphore_mem>>) src(%94 : memref<32xf32, #tpu.memory_space<any>>) dst(%96 : memref<32xf32, #tpu.memory_space<vmem>>)
    %c1_i32_40 = arith.constant 1 : i32
    %c1_i32_41 = arith.constant 1 : i32
    %99 = arith.muli %c1_i32_40, %c1_i32_41 : i32
    %c0_i32_42 = arith.constant 0 : i32
    %100 = arith.addi %c0_i32_42, %99 : i32
    %c0_i32_43 = arith.constant 0 : i32
    %c0_i32_44 = arith.constant 0 : i32
    %101 = tpu.memref_slice %arg3[%c0_i32_43, %c0_i32_44] : memref<64x32xf32, #tpu.memory_space<any>> -> memref<1x32xf32, #tpu.memory_space<any>>
    %102 = tpu.memref_squeeze %101 : memref<1x32xf32, #tpu.memory_space<any>> -> memref<32xf32, #tpu.memory_space<any>>
    %c0_i32_45 = arith.constant 0 : i32
    %103 = tpu.memref_slice %arg6[%100, %c0_i32_45] : memref<8x32xf32, #tpu.memory_space<vmem>> -> memref<1x32xf32, #tpu.memory_space<vmem>>
    %104 = tpu.memref_squeeze %103 : memref<1x32xf32, #tpu.memory_space<vmem>> -> memref<32xf32, #tpu.memory_space<vmem>>
    %105 = tpu.memref_slice %arg7[%100] : memref<8x!tpu.dma_semaphore, #tpu.memory_space<semaphore_mem>> -> memref<1x!tpu.dma_semaphore, #tpu.memory_space<semaphore_mem>>
    %106 = tpu.memref_squeeze %105 : memref<1x!tpu.dma_semaphore, #tpu.memory_space<semaphore_mem>> -> memref<!tpu.dma_semaphore, #tpu.memory_space<semaphore_mem>>
    tpu.wait_dma2 semaphore(%106 : memref<!tpu.dma_semaphore, #tpu.memory_space<semaphore_mem>>) src(%102 : memref<32xf32, #tpu.memory_space<any>>) dst(%104 : memref<32xf32, #tpu.memory_space<vmem>>)
    %c2_i32_46 = arith.constant 2 : i32
    %c1_i32_47 = arith.constant 1 : i32
    %107 = arith.muli %c2_i32_46, %c1_i32_47 : i32
    %c0_i32_48 = arith.constant 0 : i32
    %108 = arith.addi %c0_i32_48, %107 : i32
    %c0_i32_49 = arith.constant 0 : i32
    %c0_i32_50 = arith.constant 0 : i32
    %109 = tpu.memref_slice %arg3[%c0_i32_49, %c0_i32_50] : memref<64x32xf32, #tpu.memory_space<any>> -> memref<1x32xf32, #tpu.memory_space<any>>
    %110 = tpu.memref_squeeze %109 : memref<1x32xf32, #tpu.memory_space<any>> -> memref<32xf32, #tpu.memory_space<any>>
    %c0_i32_51 = arith.constant 0 : i32
    %111 = tpu.memref_slice %arg6[%108, %c0_i32_51] : memref<8x32xf32, #tpu.memory_space<vmem>> -> memref<1x32xf32, #tpu.memory_space<vmem>>
    %112 = tpu.memref_squeeze %111 : memref<1x32xf32, #tpu.memory_space<vmem>> -> memref<32xf32, #tpu.memory_space<vmem>>
    %113 = tpu.memref_slice %arg7[%108] : memref<8x!tpu.dma_semaphore, #tpu.memory_space<semaphore_mem>> -> memref<1x!tpu.dma_semaphore, #tpu.memory_space<semaphore_mem>>
    %114 = tpu.memref_squeeze %113 : memref<1x!tpu.dma_semaphore, #tpu.memory_space<semaphore_mem>> -> memref<!tpu.dma_semaphore, #tpu.memory_space<semaphore_mem>>
    tpu.wait_dma2 semaphore(%114 : memref<!tpu.dma_semaphore, #tpu.memory_space<semaphore_mem>>) src(%110 : memref<32xf32, #tpu.memory_space<any>>) dst(%112 : memref<32xf32, #tpu.memory_space<vmem>>)
    %c3_i32_52 = arith.constant 3 : i32
    %c1_i32_53 = arith.constant 1 : i32
    %115 = arith.muli %c3_i32_52, %c1_i32_53 : i32
    %c0_i32_54 = arith.constant 0 : i32
    %116 = arith.addi %c0_i32_54, %115 : i32
    %c0_i32_55 = arith.constant 0 : i32
    %c0_i32_56 = arith.constant 0 : i32
    %117 = tpu.memref_slice %arg3[%c0_i32_55, %c0_i32_56] : memref<64x32xf32, #tpu.memory_space<any>> -> memref<1x32xf32, #tpu.memory_space<any>>
    %118 = tpu.memref_squeeze %117 : memref<1x32xf32, #tpu.memory_space<any>> -> memref<32xf32, #tpu.memory_space<any>>
    %c0_i32_57 = arith.constant 0 : i32
    %119 = tpu.memref_slice %arg6[%116, %c0_i32_57] : memref<8x32xf32, #tpu.memory_space<vmem>> -> memref<1x32xf32, #tpu.memory_space<vmem>>
    %120 = tpu.memref_squeeze %119 : memref<1x32xf32, #tpu.memory_space<vmem>> -> memref<32xf32, #tpu.memory_space<vmem>>
    %121 = tpu.memref_slice %arg7[%116] : memref<8x!tpu.dma_semaphore, #tpu.memory_space<semaphore_mem>> -> memref<1x!tpu.dma_semaphore, #tpu.memory_space<semaphore_mem>>
    %122 = tpu.memref_squeeze %121 : memref<1x!tpu.dma_semaphore, #tpu.memory_space<semaphore_mem>> -> memref<!tpu.dma_semaphore, #tpu.memory_space<semaphore_mem>>
    tpu.wait_dma2 semaphore(%122 : memref<!tpu.dma_semaphore, #tpu.memory_space<semaphore_mem>>) src(%118 : memref<32xf32, #tpu.memory_space<any>>) dst(%120 : memref<32xf32, #tpu.memory_space<vmem>>)
    %c4_i32_58 = arith.constant 4 : i32
    %c1_i32_59 = arith.constant 1 : i32
    %123 = arith.muli %c4_i32_58, %c1_i32_59 : i32
    %c0_i32_60 = arith.constant 0 : i32
    %124 = arith.addi %c0_i32_60, %123 : i32
    %c0_i32_61 = arith.constant 0 : i32
    %c0_i32_62 = arith.constant 0 : i32
    %125 = tpu.memref_slice %arg3[%c0_i32_61, %c0_i32_62] : memref<64x32xf32, #tpu.memory_space<any>> -> memref<1x32xf32, #tpu.memory_space<any>>
    %126 = tpu.memref_squeeze %125 : memref<1x32xf32, #tpu.memory_space<any>> -> memref<32xf32, #tpu.memory_space<any>>
    %c0_i32_63 = arith.constant 0 : i32
    %127 = tpu.memref_slice %arg6[%124, %c0_i32_63] : memref<8x32xf32, #tpu.memory_space<vmem>> -> memref<1x32xf32, #tpu.memory_space<vmem>>
    %128 = tpu.memref_squeeze %127 : memref<1x32xf32, #tpu.memory_space<vmem>> -> memref<32xf32, #tpu.memory_space<vmem>>
    %129 = tpu.memref_slice %arg7[%124] : memref<8x!tpu.dma_semaphore, #tpu.memory_space<semaphore_mem>> -> memref<1x!tpu.dma_semaphore, #tpu.memory_space<semaphore_mem>>
    %130 = tpu.memref_squeeze %129 : memref<1x!tpu.dma_semaphore, #tpu.memory_space<semaphore_mem>> -> memref<!tpu.dma_semaphore, #tpu.memory_space<semaphore_mem>>
    tpu.wait_dma2 semaphore(%130 : memref<!tpu.dma_semaphore, #tpu.memory_space<semaphore_mem>>) src(%126 : memref<32xf32, #tpu.memory_space<any>>) dst(%128 : memref<32xf32, #tpu.memory_space<vmem>>)
    %c5_i32_64 = arith.constant 5 : i32
    %c1_i32_65 = arith.constant 1 : i32
    %131 = arith.muli %c5_i32_64, %c1_i32_65 : i32
    %c0_i32_66 = arith.constant 0 : i32
    %132 = arith.addi %c0_i32_66, %131 : i32
    %c0_i32_67 = arith.constant 0 : i32
    %c0_i32_68 = arith.constant 0 : i32
    %133 = tpu.memref_slice %arg3[%c0_i32_67, %c0_i32_68] : memref<64x32xf32, #tpu.memory_space<any>> -> memref<1x32xf32, #tpu.memory_space<any>>
    %134 = tpu.memref_squeeze %133 : memref<1x32xf32, #tpu.memory_space<any>> -> memref<32xf32, #tpu.memory_space<any>>
    %c0_i32_69 = arith.constant 0 : i32
    %135 = tpu.memref_slice %arg6[%132, %c0_i32_69] : memref<8x32xf32, #tpu.memory_space<vmem>> -> memref<1x32xf32, #tpu.memory_space<vmem>>
    %136 = tpu.memref_squeeze %135 : memref<1x32xf32, #tpu.memory_space<vmem>> -> memref<32xf32, #tpu.memory_space<vmem>>
    %137 = tpu.memref_slice %arg7[%132] : memref<8x!tpu.dma_semaphore, #tpu.memory_space<semaphore_mem>> -> memref<1x!tpu.dma_semaphore, #tpu.memory_space<semaphore_mem>>
    %138 = tpu.memref_squeeze %137 : memref<1x!tpu.dma_semaphore, #tpu.memory_space<semaphore_mem>> -> memref<!tpu.dma_semaphore, #tpu.memory_space<semaphore_mem>>
    tpu.wait_dma2 semaphore(%138 : memref<!tpu.dma_semaphore, #tpu.memory_space<semaphore_mem>>) src(%134 : memref<32xf32, #tpu.memory_space<any>>) dst(%136 : memref<32xf32, #tpu.memory_space<vmem>>)
    %c6_i32_70 = arith.constant 6 : i32
    %c1_i32_71 = arith.constant 1 : i32
    %139 = arith.muli %c6_i32_70, %c1_i32_71 : i32
    %c0_i32_72 = arith.constant 0 : i32
    %140 = arith.addi %c0_i32_72, %139 : i32
    %c0_i32_73 = arith.constant 0 : i32
    %c0_i32_74 = arith.constant 0 : i32
    %141 = tpu.memref_slice %arg3[%c0_i32_73, %c0_i32_74] : memref<64x32xf32, #tpu.memory_space<any>> -> memref<1x32xf32, #tpu.memory_space<any>>
    %142 = tpu.memref_squeeze %141 : memref<1x32xf32, #tpu.memory_space<any>> -> memref<32xf32, #tpu.memory_space<any>>
    %c0_i32_75 = arith.constant 0 : i32
    %143 = tpu.memref_slice %arg6[%140, %c0_i32_75] : memref<8x32xf32, #tpu.memory_space<vmem>> -> memref<1x32xf32, #tpu.memory_space<vmem>>
    %144 = tpu.memref_squeeze %143 : memref<1x32xf32, #tpu.memory_space<vmem>> -> memref<32xf32, #tpu.memory_space<vmem>>
    %145 = tpu.memref_slice %arg7[%140] : memref<8x!tpu.dma_semaphore, #tpu.memory_space<semaphore_mem>> -> memref<1x!tpu.dma_semaphore, #tpu.memory_space<semaphore_mem>>
    %146 = tpu.memref_squeeze %145 : memref<1x!tpu.dma_semaphore, #tpu.memory_space<semaphore_mem>> -> memref<!tpu.dma_semaphore, #tpu.memory_space<semaphore_mem>>
    tpu.wait_dma2 semaphore(%146 : memref<!tpu.dma_semaphore, #tpu.memory_space<semaphore_mem>>) src(%142 : memref<32xf32, #tpu.memory_space<any>>) dst(%144 : memref<32xf32, #tpu.memory_space<vmem>>)
    %c7_i32_76 = arith.constant 7 : i32
    %c1_i32_77 = arith.constant 1 : i32
    %147 = arith.muli %c7_i32_76, %c1_i32_77 : i32
    %c0_i32_78 = arith.constant 0 : i32
    %148 = arith.addi %c0_i32_78, %147 : i32
    %c0_i32_79 = arith.constant 0 : i32
    %c0_i32_80 = arith.constant 0 : i32
    %149 = tpu.memref_slice %arg3[%c0_i32_79, %c0_i32_80] : memref<64x32xf32, #tpu.memory_space<any>> -> memref<1x32xf32, #tpu.memory_space<any>>
    %150 = tpu.memref_squeeze %149 : memref<1x32xf32, #tpu.memory_space<any>> -> memref<32xf32, #tpu.memory_space<any>>
    %c0_i32_81 = arith.constant 0 : i32
    %151 = tpu.memref_slice %arg6[%148, %c0_i32_81] : memref<8x32xf32, #tpu.memory_space<vmem>> -> memref<1x32xf32, #tpu.memory_space<vmem>>
    %152 = tpu.memref_squeeze %151 : memref<1x32xf32, #tpu.memory_space<vmem>> -> memref<32xf32, #tpu.memory_space<vmem>>
    %153 = tpu.memref_slice %arg7[%148] : memref<8x!tpu.dma_semaphore, #tpu.memory_space<semaphore_mem>> -> memref<1x!tpu.dma_semaphore, #tpu.memory_space<semaphore_mem>>
    %154 = tpu.memref_squeeze %153 : memref<1x!tpu.dma_semaphore, #tpu.memory_space<semaphore_mem>> -> memref<!tpu.dma_semaphore, #tpu.memory_space<semaphore_mem>>
    tpu.wait_dma2 semaphore(%154 : memref<!tpu.dma_semaphore, #tpu.memory_space<semaphore_mem>>) src(%150 : memref<32xf32, #tpu.memory_space<any>>) dst(%152 : memref<32xf32, #tpu.memory_space<vmem>>)
    %c8_i32_82 = arith.constant 8 : i32
    %c0 = arith.constant 0 : index
    %c0_83 = arith.constant 0 : index
    %155 = vector.load %arg6[%c0, %c0_83] : memref<8x32xf32, #tpu.memory_space<vmem>>, vector<8x32xf32>
    %cst = arith.constant 5.65685415 : f32
    %156 = vector.broadcast %cst : f32 to vector<8x32xf32>
    %157 = arith.mulf %155, %156 : vector<8x32xf32>
    %c0_84 = arith.constant 0 : index
    %c0_85 = arith.constant 0 : index
    %158 = vector.load %arg4[%c0_84, %c0_85] : memref<8x32xf32, #tpu.memory_space<vmem>>, vector<8x32xf32>
    %159 = arith.addf %157, %158 : vector<8x32xf32>
    %c0_86 = arith.constant 0 : index
    %c0_87 = arith.constant 0 : index
    %c0_88 = arith.constant 0 : index
    %160 = vector.load %arg5[%c0_86, %c0_87, %c0_88] : memref<1x8x32xf32, #tpu.memory_space<vmem>>, vector<1x8x32xf32>
    %161 = vector.shape_cast %160 : vector<1x8x32xf32> to vector<8x32xf32>
    %162 = vector.shape_cast %159 : vector<8x32xf32> to vector<1x8x32xf32>
    tpu.vector_store %arg5[%c0_86, %c0_87, %c0_88], %162 {strides = array<i32>} : memref<1x8x32xf32, #tpu.memory_space<vmem>>, vector<1x8x32xf32>,
    return
  }
  func.func @transform_1(%arg0: i32, %arg1: i32, %arg2: memref<16xi32, #tpu.memory_space<smem>>) -> (i32, i32) {
    %c0_i32 = arith.constant 0 : i32
    %c0_i32_0 = arith.constant 0 : i32
    return %arg0, %c0_i32 : i32, i32
  }
  func.func @transform_2(%arg0: i32, %arg1: i32, %arg2: memref<16xi32, #tpu.memory_space<smem>>) -> (i32, i32, i32) {
    %c0_i32 = arith.constant 0 : i32
    %c0_i32_0 = arith.constant 0 : i32
    return %arg1, %arg0, %c0_i32 : i32, i32, i32
  }
}

</mosaic_0001>

<bundles_post_ra>
// kernel: tpu_custom_call.1
= control target key start
LH: loop header
LB: loop body
LE: loop exit
PB: predicated region body
PF: predicated region fallthrough
CT: control target
= control target key end

     0   :  { %s838_s15 = smov [#allocation5]   ;;  %s1000_s0 = inlined_call_operand.vmem [shape: s32[16], index: 0, kind: input, shape index: {}]   ;;  %s1001_s1 = inlined_call_operand.vmem [shape: f32[64,32], index: 1, kind: input, shape index: {}]   ;;  %s1002_s2 = inlined_call_operand.vmem [shape: f32[8,32], index: 2, kind: input, shape index: {}]   ;;  %s1003_s3 = inlined_call_operand.hbm [shape: f32[2,8,32], index: 3, kind: output, shape index: {}]  }
   0x1   :  { %s9_s14 = sshll.u32 %s1000_s0, 4  ;;  %s10_s14 = int_to_ptr.vmem [resolvable:$true] %s9_s14 }
   0x2   :  { %12 = dma.vmem_to_smem %s10_s14, 16, %s838_s15, [#allocation4] }
   0x3   :  { %792 = dma.done.wait [#allocation4], 16 }
   0x4   :  { %793 = vsyncadd [#allocation4], 4294967280 }
   0x5   :  { %15 = sfence }
   0x6   :  { %16 = vsyncpa [#allocation7], 0 }
   0x7   :  { %18 = vsyncpa [#allocation7 + $0x1], 0  ;;  %s862_s16 = smov 0   ;;  %s864_s17 = smov 0  }
   0x8   :  { %s866_s18 = smov 0   ;;  %s868_s19 = smov 0  }
   0x9   :  { %s870_s20 = smov 0   ;;  %s872_s21 = smov 0  }
   0xa LB: > { %s653_s0 = sadd.s32 4294967295, %s836_s21   ;;  %s654_s22 = sadd.s32 4294967294, %s836_s21   ;;  %s836_s21 = sphi %s872_s21, %s24_s21   ;;  %s832_s20 = sphi %s870_s20, %s1010_s20   ;;  %s828_s19 = sphi %s868_s19, %s1009_s19   ;;  %s824_s18 = sphi %s866_s18, %s1008_s18   ;;  %s820_s17 = sphi %s864_s17, %s1007_s17   ;;  %s816_s16 = sphi %s862_s16, %s1006_s16  }
   0xb   : > { %s33_s23 = sadd.s32 1, %s832_s20  ;;  %s71_s24 = sadd.s32 1, %s824_s18 }
   0xc   : > { %p34_p0 = scmp.ge.s32.totalorder %s33_s23, 2  ;;  %p81_p1 = scmp.ne.s32.totalorder %s824_s18, %s820_s17 }
   0xd   : > { %p82_p2 = scmp.eq.s32.totalorder %s653_s0, 1  ;;  %p87_p3 = scmp.ne.s32.totalorder %s820_s17, %s816_s16 }
   0xe   : > { %s1012_s23 = smov (%p34_p0, %s33_s23), 0  ;;  %p88_p5 = scmp.eq.s32.totalorder %s654_s22, 1 }
   0xf   : > { %p900_p4 = por %p82_p2, %p81_p1  ;;  %s66_s26 = ssub.s32 %s832_s20, %s1012_s23 }
  0x10   : > { %p657_p6 = scmp.ge.s32.totalorder %s836_s21, 1  ;;  %p69_p7 = scmp.eq.s32.totalorder %s66_s26, 0 }
  0x11   : > { %p907_p8 = por %p88_p5, %p87_p3  ;;  %p113_p9 = scmp.lt.s32.totalorder %s836_s21, 3 }
  0x12   : > { %s913_s28 = scalar_select %p69_p7, %s824_s18, %s71_s24  }
  0x13   : > { %p114_p10 = pnand %p657_p6, %p113_p9 }
  0x14   : > { %s129_s29 = sand.u32 (!%p114_p10), 1, %s820_s17   ;;  %s916_s30 = sshll.u32 (!%p114_p10), %s828_s19, 3 }
  0x15   : > { %117 = sbr.rel (%p114_p10) target bundleno = 131 (0x83), region = 24  ;;  %s920_s4 = sshll.u32 (!%p114_p10), %s129_s29, 3 }
  0x16   : > { %s139_s5 = sld [smem:[#allocation5 + %s916_s30]] (!%p114_p10)  ;;  %s131_s9 = scalar_lea.vmem (!%p114_p10), [#allocation6], %s920_s4 }
  0x1c   : > { %s140_s8 = scalar_lea.vmem %s1001_s1, %s139_s5 }
  0x1d   : > { %v155_v0 = vld [vmem:[%s140_s8] sm:$0x1] }
  0x1e   : > { %156 = vst [vmem:[#allocation2] sm:$0x1] %v155_v0 }
  0x1f   : > { %174 = vsyncadd [#allocation3], 16  ;;  %s175_s10 = sadd.s32 1, %s916_s30 }
  0x20   : > { %s176_s11 = sld [smem:[#allocation5 + %s175_s10]] }
  0x26   : > { %s177_s14 = scalar_lea.vmem %s1001_s1, %s176_s11 }
  0x27   : > { %v194_v1 = vld [vmem:[%s177_s14] sm:$0x1] }
  0x28   : > { %195 = vst [vmem:[#allocation2 + $0x1] sm:$0x1] %v194_v1 }
  0x29   : > { %213 = vsyncadd [#allocation3 + $0x1], 16  ;;  %s214_s15 = sadd.s32 2, %s916_s30 }
  0x2a   : > { %s215_s19 = sld [smem:[#allocation5 + %s214_s15]] }
  0x30   : > { %s216_s24 = scalar_lea.vmem %s1001_s1, %s215_s19 }
  0x31   : > { %v233_v2 = vld [vmem:[%s216_s24] sm:$0x1] }
  0x32   : > { %234 = vst [vmem:[#allocation2 + $0x2] sm:$0x1] %v233_v2 }
  0x33   : > { %252 = vsyncadd [#allocation3 + $0x2], 16  ;;  %s253_s26 = sadd.s32 3, %s916_s30 }
  0x34   : > { %s254_s5 = sld [smem:[#allocation5 + %s253_s26]] }
  0x3a   : > { %s255_s8 = scalar_lea.vmem %s1001_s1, %s254_s5 }
  0x3b   : > { %v272_v3 = vld [vmem:[%s255_s8] sm:$0x1] }
  0x3c   : > { %273 = vst [vmem:[#allocation2 + $0x3] sm:$0x1] %v272_v3 }
  0x3d   : > { %291 = vsyncadd [#allocation3 + $0x3], 16  ;;  %s292_s10 = sadd.s32 4, %s916_s30 }
  0x3e   : > { %s293_s11 = sld [smem:[#allocation5 + %s292_s10]] }
  0x44   : > { %s294_s14 = scalar_lea.vmem %s1001_s1, %s293_s11 }
  0x45   : > { %v311_v4 = vld [vmem:[%s294_s14] sm:$0x1] }
  0x46   : > { %312 = vst [vmem:[#allocation2 + $0x4] sm:$0x1] %v311_v4 }
  0x47   : > { %330 = vsyncadd [#allocation3 + $0x4], 16  ;;  %s331_s15 = sadd.s32 5, %s916_s30 }
  0x48   : > { %s332_s19 = sld [smem:[#allocation5 + %s331_s15]] }
  0x4e   : > { %s333_s24 = scalar_lea.vmem %s1001_s1, %s332_s19 }
  0x4f   : > { %v350_v5 = vld [vmem:[%s333_s24] sm:$0x1] }
  0x50   : > { %351 = vst [vmem:[#allocation2 + $0x5] sm:$0x1] %v350_v5 }
  0x51   : > { %369 = vsyncadd [#allocation3 + $0x5], 16  ;;  %s370_s26 = sadd.s32 6, %s916_s30 }
  0x52   : > { %s371_s5 = sld [smem:[#allocation5 + %s370_s26]] }
  0x58   : > { %s372_s8 = scalar_lea.vmem %s1001_s1, %s371_s5 }
  0x59   : > { %v389_v6 = vld [vmem:[%s372_s8] sm:$0x1] }
  0x5a   : > { %390 = vst [vmem:[#allocation2 + $0x6] sm:$0x1] %v389_v6 }
  0x5b   : > { %408 = vsyncadd [#allocation3 + $0x6], 16  ;;  %s409_s10 = sadd.s32 7, %s916_s30 }
  0x5c   : > { %s410_s11 = sld [smem:[#allocation5 + %s409_s10]] }
  0x62   : > { %s411_s14 = scalar_lea.vmem %s1001_s1, %s410_s11 }
  0x63   : > { %v428_v7 = vld [vmem:[%s411_s14] sm:$0x1] }
  0x64   : > { %429 = vst [vmem:[#allocation2 + $0x7] sm:$0x1] %v428_v7 }
  0x65   : > { %447 = vsyncadd [#allocation3 + $0x7], 16 }
  0x66   : > { %794 = dma.done.wait [#allocation3], 16 }
  0x67   : > { %795 = vsyncadd [#allocation3], 4294967280 }
  0x68   : > { %796 = dma.done.wait [#allocation3 + $0x1], 16 }
  0x69   : > { %797 = vsyncadd [#allocation3 + $0x1], 4294967280 }
  0x6a   : > { %798 = dma.done.wait [#allocation3 + $0x2], 16 }
  0x6b   : > { %799 = vsyncadd [#allocation3 + $0x2], 4294967280 }
  0x6c   : > { %800 = dma.done.wait [#allocation3 + $0x3], 16 }
  0x6d   : > { %801 = vsyncadd [#allocation3 + $0x3], 4294967280 }
  0x6e   : > { %802 = dma.done.wait [#allocation3 + $0x4], 16 }
  0x6f   : > { %803 = vsyncadd [#allocation3 + $0x4], 4294967280 }
  0x70   : > { %804 = dma.done.wait [#allocation3 + $0x5], 16 }
  0x71   : > { %805 = vsyncadd [#allocation3 + $0x5], 4294967280 }
  0x72   : > { %806 = dma.done.wait [#allocation3 + $0x6], 16 }
  0x73   : > { %807 = vsyncadd [#allocation3 + $0x6], 4294967280 }
  0x74   : > { %808 = dma.done.wait [#allocation3 + $0x7], 16 }
  0x75   : > { %809 = vsyncadd [#allocation3 + $0x7], 4294967280  ;;  %s482_s0 = scalar_lea.hbm %s1003_s3, %s916_s30  ;;  %v464_v8 = vld [vmem:[#allocation2] sm:$0xff]  ;;  %s484_s26 = sshll.u32 %s131_s9, 4  ;;  %vm468_vm0 = vcmask 261120   ;;  %s485_s26 = int_to_ptr.vmem [resolvable:$true] %s484_s26 }
  0x76   : > { %v466_v9 = vld [vmem:[%s1002_s2] sm:$0xff]  ;;  %s486_s5 = sshll.u32 %s482_s0, 4  ;;  %v465_v10 = vmul.f32 5.656854, %v464_v8  ;;  %s471_s6 = scalar_lea.sflag [#allocation7], %s129_s29  ;;  %s487_s5 = int_to_ptr.hbm [resolvable:$true] %s486_s5 }
  0x77   : > { %s754_s7 = sshra.s32 %s487_s5, 4  ;;  %s760_s11 = scalar_lea.hbm %s1003_s3, 16  ;;  %s755_s7 = int_to_ptr.hbm [resolvable:$true] %s754_s7 }
  0x78   : > { %v467_v11 = vadd.f32 %v466_v9, %v465_v10  ;;  %s756_s30 = scalar_lea.hbm %s755_s7, 8  ;;  %p761_p0 = scmp.lt.s32.totalorder %s755_s7, %s1003_s3 }
  0x79   : > { %p757_p11 = scmp.ne.s32.totalorder %s755_s7, %s756_s30  ;;  %p762_p1 = scmp.lt.s32.totalorder %s760_s11, %s756_s30 }
  0x7a   : > { %469 = vst.msk [vmem:[%s131_s9] sm:$0xff] %vm468_vm0, %v467_v11 }
  0x7b   : > { %p758_p12 = pnand %p757_p11, %p900_p4  ;;  %p763_p2 = por %p762_p1, %p761_p0 }
  0x7d   : > { %p759_p13 = pneg %p758_p12 }
  0x7f   : > { %p764_p3 = pnand %p763_p2, %p759_p13 }
  0x81   : > { %767 = shalt.err (!%p764_p3)
}
  0x82   : > { %672 = dma.vmem_to_hbm [thread:$0]  (%p900_p4), %s485_s26, 128, %s487_s5, %s471_s6  }
  0x83 PF: > { %p678_p5 = scmp.ge.s32.totalorder %s836_s21, 2  ;;  %s498_s29 = sand.u32 1, %s816_s16  }
  0x84   : > { %s499_s4 = scalar_lea.sflag [#allocation7], %s498_s29 }
  0x85   : > { %p675_p6 = pnand %p678_p5, %p907_p8 }
  0x87   : > { %p676_p7 = pneg %p675_p6 }
  0x89   : > { %811 = dma.done.wait (%p676_p7), %s499_s4, 128  }
  0x8a   : > { %813 = vsyncadd (%p676_p7), %s499_s4, 4294967168  ;;  %s24_s21 = sadd.s32 1, %s836_s21   ;;  %s1006_s16 = smov %s820_s17 }
  0x8b   : > { %p21_p9 = scmp.ge.s32.totalorder %s24_s21, 4   ;;  %s1007_s17 = smov %s824_s18 }
  0x8c   : > { %s1008_s18 = smov %s913_s28  ;;  %s1009_s19 = smov %s832_s20 }
  0x8d   : > { %s1010_s20 = smov %s1012_s23  ;;  %23 = sbr.rel (!%p21_p9) target bundleno = 10 (0xa), region = 360 }
  0x92   :  { %505 = vsyncpa [#allocation7], 1 }
  0x93   :  { %507 = vsyncpa [#allocation7 + $0x1], 1 }
  0x94   :  { %508 = vsyncmov [#allocation3] }
  0x97   :  { %s509_s25 = vpop.sfrf %508 }
  0x98   :  { %p664_p4 = scmp.ne.s32.totalorder %s509_s25, 0 }
  0x9a   :  { %513 = shalt.err (%p664_p4)  }
  0x9b   :  { %515 = vsyncmov [#allocation3 + $0x1] }
  0x9e   :  { %s516_s27 = vpop.sfrf %515 }
  0x9f   :  { %p665_p8 = scmp.ne.s32.totalorder %s516_s27, 0 }
  0xa1   :  { %520 = shalt.err (%p665_p8)  }
  0xa2   :  { %522 = vsyncmov [#allocation3 + $0x2] }
  0xa5   :  { %s523_s9 = vpop.sfrf %522 }
  0xa6   :  { %p666_p10 = scmp.ne.s32.totalorder %s523_s9, 0 }
  0xa8   :  { %527 = shalt.err (%p666_p10)  }
  0xa9   :  { %529 = vsyncmov [#allocation3 + $0x3] }
  0xac   :  { %s530_s28 = vpop.sfrf %529 }
  0xad   :  { %p667_p11 = scmp.ne.s32.totalorder %s530_s28, 0 }
  0xaf   :  { %534 = shalt.err (%p667_p11)  }
  0xb0   :  { %536 = vsyncmov [#allocation3 + $0x4] }
  0xb3   :  { %s537_s21 = vpop.sfrf %536 }
  0xb4   :  { %p668_p12 = scmp.ne.s32.totalorder %s537_s21, 0 }
  0xb6   :  { %541 = shalt.err (%p668_p12)  }
  0xb7   :  { %543 = vsyncmov [#allocation3 + $0x5] }
  0xba   :  { %s544_s1 = vpop.sfrf %543 }
  0xbb   :  { %p669_p13 = scmp.ne.s32.totalorder %s544_s1, 0 }
  0xbd   :  { %548 = shalt.err (%p669_p13)  }
  0xbe   :  { %550 = vsyncmov [#allocation3 + $0x6] }
  0xc1   :  { %s551_s2 = vpop.sfrf %550 }
  0xc2   :  { %p670_p0 = scmp.ne.s32.totalorder %s551_s2, 0 }
  0xc4   :  { %555 = shalt.err (%p670_p0)  }
  0xc5   :  { %557 = vsyncmov [#allocation3 + $0x7] }
  0xc8   :  { %s558_s3 = vpop.sfrf %557 }
  0xc9   :  { %p671_p1 = scmp.ne.s32.totalorder %s558_s3, 0 }
  0xcb   :  { %562 = shalt.err (%p671_p1)  }

</bundles_post_ra>
